<compile_context>
chip_gen: v7x
topology: tpu7x:2x2x1
jax: 0.10.0
libtpu: 0.0.40
codegen_flags: <defaults>
</compile_context>

<pallas_src>
import functools

import jax
import jax.numpy as jnp
from jax.experimental import pallas as pl
from jax.experimental.pallas import tpu as pltpu


# ---------------------------------------------------------------------------
# Pallas kernel: fused Linear (x @ W + b) with K-tiled accumulation
# ---------------------------------------------------------------------------

def linear_kernel(x_ref, w_ref, b_ref, o_ref, acc_ref):
    """One (tile_m, tile_n) output block, accumulated over K tiles.

    x_ref:   (tile_m, tile_k)
    w_ref:   (tile_k, tile_n)
    b_ref:   (1, tile_n) f32
    o_ref:   (tile_m, tile_n)
    acc_ref: (tile_m, tile_n) f32 VMEM scratch, persists across the K axis
    """
    k = pl.program_id(2)

    # Fold the bias into the accumulator init (no zero-fill + epilogue add).
    @pl.when(k == 0)
    def _():
        acc_ref[...] = jnp.broadcast_to(b_ref[...], acc_ref.shape)

    acc_ref[...] += jnp.dot(x_ref[...], w_ref[...],
                            preferred_element_type=jnp.float32)

    @pl.when(k == pl.num_programs(2) - 1)
    def _():
        o_ref[...] = acc_ref[...].astype(o_ref.dtype)


# ---------------------------------------------------------------------------
# Tile selection: pad-to-multiple instead of full-dim fallback
# ---------------------------------------------------------------------------

def _ceil_to(x, m):
    return ((x + m - 1) // m) * m


def _tile_and_pad(dim, target, align):
    """Pick a tile (multiple of `align`, at most `target`) and the padded dim.

    `target` must itself be a multiple of `align`.
    """
    if dim <= target:
        t = _ceil_to(dim, align)
        return t, t
    return target, _ceil_to(dim, target)


def baseline_network_forward(h_t, w, b):
    """b_t = h_t @ w + b   (PyTorch: fc(h_t.detach()))

    h_t: (..., Fin)  — leading dims are flattened into the matmul M.
    w:   (Fin, Fout) — transposed vs. PyTorch's (Fout, Fin) storage.
    b:   (Fout,)
    """
    orig_shape = h_t.shape
    Fin = orig_shape[-1]
    Fout = w.shape[1]
    M = 1
    for d in orig_shape[:-1]:
        M *= d

    # VMEM-budgeted tile targets (~7.5 MiB double-buffered): safe on v5e's
    # 16 MiB scoped default, v6e's 32 MiB, and v7x's 32 MiB (64 MiB physical).
    tile_m, M_pad = _tile_and_pad(M, 512, 8)
    tile_n, N_pad = _tile_and_pad(Fout, 256, 128)   # lane-dense output (>=128)
    tile_k, K_pad = _tile_and_pad(Fin, 1024, 128)

    x = h_t.reshape(M, Fin)
    if (M_pad, K_pad) != (M, Fin):
        x = jnp.pad(x, ((0, M_pad - M), (0, K_pad - Fin)))
    w_p = w
    if (K_pad, N_pad) != (Fin, Fout):
        w_p = jnp.pad(w, ((0, K_pad - Fin), (0, N_pad - Fout)))
    b2d = jnp.pad(b.astype(jnp.float32), (0, N_pad - Fout)).reshape(1, N_pad)

    grid = (M_pad // tile_m, N_pad // tile_n, K_pad // tile_k)

    out = pl.pallas_call(
        linear_kernel,
        out_shape=jax.ShapeDtypeStruct((M_pad, N_pad), h_t.dtype),
        grid_spec=pltpu.PrefetchScalarGridSpec(
            num_scalar_prefetch=0,
            grid=grid,
            in_specs=[
                pl.BlockSpec((tile_m, tile_k), lambda i, j, k: (i, k)),
                pl.BlockSpec((tile_k, tile_n), lambda i, j, k: (k, j)),
                pl.BlockSpec((1, tile_n), lambda i, j, k: (0, j)),
            ],
            out_specs=pl.BlockSpec((tile_m, tile_n), lambda i, j, k: (i, j)),
            scratch_shapes=[pltpu.VMEM((tile_m, tile_n), jnp.float32)],
        ),
        compiler_params=pltpu.CompilerParams(
            dimension_semantics=("parallel", "parallel", "arbitrary"),
            vmem_limit_bytes=32 * 1024 * 1024),
    )(x, w_p, b2d)

    out = out[:M, :Fout]
    return out.reshape(*orig_shape[:-1], Fout)


# ---------------------------------------------------------------------------
# Parameter construction (PyTorch nn.Linear default init)
# ---------------------------------------------------------------------------

def make_params(key, input_size, output_size):
    k_w, k_b = jax.random.split(key)
    bound = input_size ** -0.5
    # stored as (Fin, Fout) so the kernel does x @ w directly
    w = jax.random.uniform(k_w, (input_size, output_size), jnp.float32,
                           -bound, bound)
    b = jax.random.uniform(k_b, (output_size,), jnp.float32, -bound, bound)
    return w, b


# ---------------------------------------------------------------------------

if __name__ == "__main__":
    B = 2
    input_size = 128      # hidden-state feature dim fed to the baseline head
    output_size = 32

    root = jax.random.PRNGKey(0)
    k_params, k_x = jax.random.split(root)
    w, b = make_params(k_params, input_size, output_size)
    h_t = jax.random.normal(k_x, (B, input_size), jnp.float32)

    fwd = jax.jit(functools.partial(baseline_network_forward, w=w, b=b))
    out = fwd(h_t)
    out = jax.block_until_ready(out)

    # correctness vs. plain-JAX reference of the PyTorch forward
    ref = h_t @ w + b
    assert out.shape == (B, output_size), out.shape
    assert bool(jnp.all(jnp.isfinite(out)))
    assert bool(jnp.allclose(out, ref, atol=1e-5, rtol=1e-5)), \
        float(jnp.max(jnp.abs(out - ref)))

    # also exercise a non-128-multiple shape to check the pad/slice path
    Fin2, Fout2 = 200, 17
    w2, b2 = make_params(k_params, Fin2, Fout2)
    h2 = jax.random.normal(k_x, (3, Fin2), jnp.float32)
    out2 = jax.block_until_ready(baseline_network_forward(h2, w2, b2))
    ref2 = h2 @ w2 + b2
    assert out2.shape == (3, Fout2)
    assert bool(jnp.allclose(out2, ref2, atol=1e-5, rtol=1e-5)), \
        float(jnp.max(jnp.abs(out2 - ref2)))

    print("KERNEL_OK")
</pallas_src>

<mosaic_0001>
module attributes {stable_mosaic.version = 11 : i64} {
  func.func @linear_kernel(%arg0: i32, %arg1: i32, %arg2: i32, %arg3: memref<8x128xf32, #tpu.memory_space<vmem>>, %arg4: memref<128x128xf32, #tpu.memory_space<vmem>>, %arg5: memref<1x128xf32, #tpu.memory_space<vmem>>, %arg6: memref<8x128xf32, #tpu.memory_space<vmem>>, %arg7: memref<8x128xf32, #tpu.memory_space<vmem>>) attributes {dimension_semantics = [#tpu.dimension_semantics<parallel>, #tpu.dimension_semantics<parallel>, #tpu.dimension_semantics<arbitrary>], iteration_bounds = array<i64: 1, 1, 1>, scalar_prefetch = 0 : i64, scratch_operands = 1 : i64, tpu.core_type = #tpu.core_type<tc>, window_params = [{transform_indices = @transform_0, window_bounds = array<i64: 8, 128>}, {transform_indices = @transform_1, window_bounds = array<i64: 128, 128>}, {transform_indices = @transform_2, window_bounds = array<i64: 1, 128>}, {transform_indices = @transform_3, window_bounds = array<i64: 8, 128>}]} {
    %c0_i32 = arith.constant 0 : i32
    %0 = arith.cmpi eq, %arg2, %c0_i32 : i32
    %1 = arith.extui %0 : i1 to i32
    %c0_i32_0 = arith.constant 0 : i32
    %2 = arith.cmpi ne, %1, %c0_i32_0 : i32
    scf.if %2 {
      %c0_10 = arith.constant 0 : index
      %c0_11 = arith.constant 0 : index
      %12 = vector.load %arg5[%c0_10, %c0_11] : memref<1x128xf32, #tpu.memory_space<vmem>>, vector<1x128xf32>
      %13 = vector.shape_cast %12 : vector<1x128xf32> to vector<1x128xf32>
      %14 = vector.broadcast %13 : vector<1x128xf32> to vector<8x128xf32>
      %c0_12 = arith.constant 0 : index
      %c0_13 = arith.constant 0 : index
      %15 = vector.load %arg7[%c0_12, %c0_13] : memref<8x128xf32, #tpu.memory_space<vmem>>, vector<8x128xf32>
      tpu.vector_store %arg7[%c0_12, %c0_13], %14 {strides = array<i32>} : memref<8x128xf32, #tpu.memory_space<vmem>>, vector<8x128xf32>,
    } else {
    }
    %c0 = arith.constant 0 : index
    %c0_1 = arith.constant 0 : index
    %3 = vector.load %arg7[%c0, %c0_1] : memref<8x128xf32, #tpu.memory_space<vmem>>, vector<8x128xf32>
    %c0_2 = arith.constant 0 : index
    %c0_3 = arith.constant 0 : index
    %4 = vector.load %arg3[%c0_2, %c0_3] : memref<8x128xf32, #tpu.memory_space<vmem>>, vector<8x128xf32>
    %c0_4 = arith.constant 0 : index
    %c0_5 = arith.constant 0 : index
    %5 = vector.load %arg4[%c0_4, %c0_5] : memref<128x128xf32, #tpu.memory_space<vmem>>, vector<128x128xf32>
    %cst = arith.constant dense<0.000000e+00> : vector<8x128xf32>
    %6 = tpu.matmul %4, %5, %cst {dimension_numbers = #tpu.dot_dimension_numbers<[1], [0], [0], [1], [0, 0, 1, 1], [], []>} : vector<8x128xf32>, vector<128x128xf32>, vector<8x128xf32> -> vector<8x128xf32>
    %7 = arith.addf %3, %6 : vector<8x128xf32>
    %c0_6 = arith.constant 0 : index
    %c0_7 = arith.constant 0 : index
    %8 = vector.load %arg7[%c0_6, %c0_7] : memref<8x128xf32, #tpu.memory_space<vmem>>, vector<8x128xf32>
    tpu.vector_store %arg7[%c0_6, %c0_7], %7 {strides = array<i32>} : memref<8x128xf32, #tpu.memory_space<vmem>>, vector<8x128xf32>,
    %c0_i32_8 = arith.constant 0 : i32
    %9 = arith.cmpi eq, %arg2, %c0_i32_8 : i32
    %10 = arith.extui %9 : i1 to i32
    %c0_i32_9 = arith.constant 0 : i32
    %11 = arith.cmpi ne, %10, %c0_i32_9 : i32
    scf.if %11 {
      %c0_10 = arith.constant 0 : index
      %c0_11 = arith.constant 0 : index
      %12 = vector.load %arg7[%c0_10, %c0_11] : memref<8x128xf32, #tpu.memory_space<vmem>>, vector<8x128xf32>
      %c0_12 = arith.constant 0 : index
      %c0_13 = arith.constant 0 : index
      %13 = vector.load %arg6[%c0_12, %c0_13] : memref<8x128xf32, #tpu.memory_space<vmem>>, vector<8x128xf32>
      tpu.vector_store %arg6[%c0_12, %c0_13], %12 {strides = array<i32>} : memref<8x128xf32, #tpu.memory_space<vmem>>, vector<8x128xf32>,
    } else {
    }
    return
  }
  func.func @transform_0(%arg0: i32, %arg1: i32, %arg2: i32) -> (i32, i32) {
    %c0_i32 = arith.constant 0 : i32
    return %arg0, %arg2 : i32, i32
  }
  func.func @transform_1(%arg0: i32, %arg1: i32, %arg2: i32) -> (i32, i32) {
    %c0_i32 = arith.constant 0 : i32
    return %arg2, %arg1 : i32, i32
  }
  func.func @transform_2(%arg0: i32, %arg1: i32, %arg2: i32) -> (i32, i32) {
    %c0_i32 = arith.constant 0 : i32
    %c0_i32_0 = arith.constant 0 : i32
    return %c0_i32, %arg1 : i32, i32
  }
  func.func @transform_3(%arg0: i32, %arg1: i32, %arg2: i32) -> (i32, i32) {
    %c0_i32 = arith.constant 0 : i32
    return %arg0, %arg1 : i32, i32
  }
}

</mosaic_0001>

<bundles_post_ra>
// kernel: baseline_network_forward.1
= control target key start
LH: loop header
LB: loop body
LE: loop exit
PB: predicated region body
PF: predicated region fallthrough
CT: control target
= control target key end

     0   :  { %8 = vsyncpa [#allocation4], 0  ;;  %s247_s12 = smov [#allocation3]   ;;  %s294_s0 = inlined_call_operand.vmem [shape: f32[8,128], index: 0, kind: input, shape index: {}]   ;;  %s295_s1 = inlined_call_operand.hbm [shape: f32[128,128], index: 1, kind: input, shape index: {}]   ;;  %s296_s2 = inlined_call_operand.vmem [shape: f32[1,128], index: 2, kind: input, shape index: {}]   ;;  %s297_s3 = inlined_call_operand.vmem [shape: f32[8,128], index: 3, kind: output, shape index: {}]  }
   0x1   :  { %s16_s13 = sshll.u32 %s247_s12, 4  ;;  %s223_s16 = scalar_lea.hbm %s295_s1, 2048  ;;  %s17_s13 = int_to_ptr.vmem [resolvable:$true] %s16_s13 }
   0x2   :  { %p224_p0 = scmp.ne.s32.totalorder %s295_s1, %s223_s16  ;;  %p227_p1 = scmp.lt.u32.totalorder %s223_s16, %s295_s1 }
   0x4   :  { %p229_p2 = pnand %p227_p1, %p224_p0 }
   0x6   :  { %232 = shalt.err (!%p229_p2)
}
   0x7   :  { %s233_s21 = scalar_lea.vmem %s17_s13, 2048  ;;  %p238_p4 = scmp.lt.s32.totalorder %s17_s13, %s17_s13 }
   0x8   :  { %p234_p3 = scmp.ne.s32.totalorder %s17_s13, %s233_s21  ;;  %p239_p5 = scmp.lt.s32.totalorder %s233_s21, %s233_s21 }
   0xa   :  { %p240_p6 = por %p239_p5, %p238_p4 }
   0xc   :  { %p241_p7 = pnand %p240_p6, %p234_p3 }
   0xe   :  { %244 = shalt.err (!%p241_p7)
}
   0xf   :  { %s248_s22 = smov 128   ;;  %s249_s23 = smov 8  }
  0x10   :  { %22 = dma.hbm_to_vmem [thread:$0]  %s295_s1, 2048, %s17_s13, [#allocation4], %s248_s22, %s248_s22, %s249_s23  }
  0x11   :  { %245 = dma.done.wait [#allocation4], 2048  }
  0x12   :  { %246 = vsyncadd [#allocation4], 4294965248  ;;  %v250_v0 = vmov 0.0|0.0   ;;  %vm251_vm0 = vmmov 0   ;;  %v252_v1 = vmov 0.0   ;;  %v42_v2 = vld [vmem:[#allocation3] sm:$0xff] }
  0x13   :  { %193 = vmatprep.subr.bf16.mxu0 %v250_v0  ;;  %190 = vmatprep.mubr.msk.f32.mxu0 %vm251_vm0, %v252_v1  ;;  %v43_v3 = vld [vmem:[#allocation3 + $0x8] sm:$0xff]  ;;  %v44_v4 = vld [vmem:[#allocation3 + $0x10] sm:$0xff]  ;;  %v45_v6 = vld [vmem:[#allocation3 + $0x18] sm:$0xff] }
  0x14   :  { %v194_v5 = vpack.c.bf16 %v43_v3, %v42_v2  ;;  %v197_v7 = vpack.c.bf16 %v45_v6, %v44_v4  ;;  %v46_v8 = vld [vmem:[#allocation3 + $0x20] sm:$0xff]  ;;  %v47_v9 = vld [vmem:[#allocation3 + $0x28] sm:$0xff]  ;;  %v48_v11 = vld [vmem:[#allocation3 + $0x30] sm:$0xff] }
  0x15   :  { %v200_v10 = vpack.c.bf16 %v47_v9, %v46_v8  ;;  %v49_v12 = vld [vmem:[#allocation3 + $0x38] sm:$0xff]  ;;  %v50_v14 = vld [vmem:[#allocation3 + $0x40] sm:$0xff]  ;;  %v51_v15 = vld [vmem:[#allocation3 + $0x48] sm:$0xff] }
  0x16   :  { %195 = vmatpush3.bf16.msra.mxu0 %v194_v5  ;;  %v203_v13 = vpack.c.bf16 %v49_v12, %v48_v11  ;;  %v206_v16 = vpack.c.bf16 %v51_v15, %v50_v14  ;;  %v52_v17 = vld [vmem:[#allocation3 + $0x50] sm:$0xff]  ;;  %v53_v18 = vld [vmem:[#allocation3 + $0x58] sm:$0xff]  ;;  %v54_v20 = vld [vmem:[#allocation3 + $0x60] sm:$0xff] }
  0x17   :  { %196 = vmatprep.subr.bf16.mxu0 %v250_v0  ;;  %v209_v19 = vpack.c.bf16 %v53_v18, %v52_v17  ;;  %v55_v21 = vld [vmem:[#allocation3 + $0x68] sm:$0xff]  ;;  %v56_v23 = vld [vmem:[#allocation3 + $0x70] sm:$0xff]  ;;  %v57_v24 = vld [vmem:[#allocation3 + $0x78] sm:$0xff] }
  0x18   :  { %v212_v22 = vpack.c.bf16 %v55_v21, %v54_v20  ;;  %v215_v25 = vpack.c.bf16 %v57_v24, %v56_v23  ;;  %v41_v26 = vld [vmem:[%s294_s0] sm:$0xff] }
  0x19   :  { %v140_v27 = vld [vmem:[%s296_s2] ss:$0 sm:$0xff] }
  0x1a   :  { %198 = vmatpush3.bf16.msra.mxu0 %v197_v7 }
  0x1b   :  { %199 = vmatprep.subr.bf16.mxu0 %v250_v0 }
  0x1e   :  { %201 = vmatpush3.bf16.msra.mxu0 %v200_v10 }
  0x1f   :  { %202 = vmatprep.subr.bf16.mxu0 %v250_v0 }
  0x22   :  { %204 = vmatpush3.bf16.msra.mxu0 %v203_v13 }
  0x23   :  { %205 = vmatprep.subr.bf16.mxu0 %v250_v0 }
  0x26   :  { %207 = vmatpush3.bf16.msra.mxu0 %v206_v16 }
  0x27   :  { %208 = vmatprep.subr.bf16.mxu0 %v250_v0 }
  0x2a   :  { %210 = vmatpush3.bf16.msra.mxu0 %v209_v19 }
  0x2b   :  { %211 = vmatprep.subr.bf16.mxu0 %v250_v0 }
  0x2e   :  { %213 = vmatpush3.bf16.msra.mxu0 %v212_v22 }
  0x2f   :  { %214 = vmatprep.subr.bf16.mxu0 %v250_v0 }
  0x32   :  { %216 = vmatpush3.bf16.msra.mxu0 %v215_v25 }
  0x35   :  { %191 = vmatmul.mubr.f32.vlgmr.msra.gmra.mrb[0].mxu0 %v41_v26 }
 0x108   :  { %v124_v28 = vpop.f32.mrb[0].mxu0 }
 0x109   :  { %v128_v29 = vadd.f32 %v140_v27, %v124_v28  ;;  %v192_v30 = vpop.f32.mrb[1].mxu0 }
 0x10b   :  { %134 = vst [vmem:[%s297_s3] sm:$0xff] %v128_v29 }
 0x10c   :  { %139 = vsyncpa [#allocation4], 1 }

</bundles_post_ra>
